<compile_context>
chip_gen: v6e
topology: v6e:2x2x1
jax: 0.10.0
libtpu: 0.0.40
codegen_flags: <defaults>
</compile_context>

<pallas_src>
import math

import jax
import jax.numpy as jnp
from jax import lax
from jax.experimental import pallas as pl
from jax.experimental.pallas import tpu as pltpu


def _cross_attention_kernel(x_ref, y_ref, wq_ref, wk_ref, wv_ref, o_ref,
                            k_scr, v_scr):
    qi = pl.program_id(1)

    # k/v projections depend only on the batch element: compute them once per
    # batch (first query tile) into compute-dtype VMEM scratch and reuse them
    # for every query tile of that batch.
    @pl.when(qi == 0)
    def _():
        y = y_ref[...]                                               # (Vk, C)
        k_scr[...] = jnp.dot(
            y, wk_ref[...], preferred_element_type=jnp.float32
        ).astype(k_scr.dtype)                                        # (Vk, H)
        v_scr[...] = jnp.dot(
            y, wv_ref[...], preferred_element_type=jnp.float32
        ).astype(v_scr.dtype)                                        # (Vk, C)

    # Q projection (Wq already carries the H**-0.5 softmax scale); f32 MXU
    # accumulation, then round to the compute dtype for the score matmul.
    q = jnp.dot(x_ref[...], wq_ref[...],
                preferred_element_type=jnp.float32)                  # (TQ, H) f32
    q_c = q.astype(k_scr.dtype)

    # Attention scores: contract over H directly (no k.T transpose / relayout);
    # compute-dtype operands, f32 accumulation.
    s = lax.dot_general(q_c, k_scr[...],
                        dimension_numbers=(((1,), (1,)), ((), ())),
                        preferred_element_type=jnp.float32)          # (TQ, Vk) f32

    # Numerically stable softmax statistics in f32.
    m = jnp.max(s, axis=-1, keepdims=True)
    e = jnp.exp(s - m)                                               # (TQ, Vk) f32
    denom = jnp.sum(e, axis=-1, keepdims=True)                       # (TQ, 1)  f32

    # Unnormalized PV matmul in the compute dtype (e in [0,1] -> safe cast),
    # then defer the softmax normalization to the (TQ, C) output: a small
    # multiply instead of a (TQ, Vk) broadcast multiply over the score tile.
    pv = jnp.dot(e.astype(v_scr.dtype), v_scr[...],
                 preferred_element_type=jnp.float32)                 # (TQ, C) f32
    out = pv * pl.reciprocal(denom, approx=True)                     # EUP vrcp
    o_ref[...] = out.astype(o_ref.dtype)


def _round_up(x, m):
    return ((x + m - 1) // m) * m


def _pick_q_tile(vq, vk, max_tile):
    """Query tile: multiple of 8, <= max_tile, and additionally capped so the
    f32 (TQ, Vk) score tile stays ~<= 2 MiB."""
    score_budget_bytes = 2 * 1024 * 1024
    cap = max(8, (score_budget_bytes // (4 * max(vk, 1))) // 8 * 8)
    cap = min(cap, max(8, (max_tile // 8) * 8))
    return min(_round_up(max(vq, 1), 8), cap)


def _estimate_vmem_limit(tq, vk, c, h, in_bytes, out_bytes):
    """Rough per-step VMEM working set -> scoped limit with headroom."""
    db = 2  # default double-buffering of pipelined inputs / outputs
    est = (db * tq * c * in_bytes                     # x tile
           + db * tq * c * out_bytes                  # out tile
           + db * vk * c * in_bytes                   # y
           + db * (2 * c * h + c * c) * in_bytes      # wq, wk, wv
           + vk * (h + c) * in_bytes                  # k/v scratch (persistent)
           + 3 * tq * vk * 4                          # f32 score / exp temps
           + tq * (h + c) * 4)                        # q / pv f32 temps
    est = int(est * 1.25)
    # Clamp into a range every generation can honor (v7x physical VMEM is
    # 64 MiB; default scoped limits are only 16/32 MiB).
    return min(max(est, 32 * 1024 * 1024), 60 * 1024 * 1024)


def cross_attention(x, y, wq, wk, wv, *, max_q_tile=256,
                    compute_dtype=jnp.bfloat16):
    """x: (N, Vq, C), y: (N, Vk, C), wq/wk: (C, H), wv: (C, C) -> (N, Vq, C)."""
    n, vq, c = x.shape
    _, vk, _ = y.shape
    h = wq.shape[1]
    out_dtype = x.dtype

    # Fold the softmax scale into the Q projection weight (one (C, H) multiply
    # per call instead of scaling the (TQ, Vk) score matrix every grid step),
    # then downcast everything to the compute dtype so QK^T / PV actually hit
    # the bf16 MXU path; accumulation stays f32 inside the kernel.
    scale = float(h) ** -0.5
    wq = (wq.astype(jnp.float32) * scale).astype(compute_dtype)
    wk = wk.astype(compute_dtype)
    wv = wv.astype(compute_dtype)
    x = x.astype(compute_dtype)
    y = y.astype(compute_dtype)

    # Pick the query tile and pad Vq up to a multiple of it (output sliced
    # back); no pathological full-Vq fallback tile any more.
    tq = _pick_q_tile(vq, vk, max_q_tile)
    vq_pad = _round_up(vq, tq)
    if vq_pad != vq:
        x = jnp.pad(x, ((0, 0), (0, vq_pad - vq), (0, 0)))

    grid = (n, vq_pad // tq)

    in_bytes = jnp.dtype(compute_dtype).itemsize
    out_bytes = jnp.dtype(out_dtype).itemsize
    vmem_limit = _estimate_vmem_limit(tq, vk, c, h, in_bytes, out_bytes)

    # TODO(synk): for very long key sequences add a third ("arbitrary") Vk grid
    # axis with flash-style online softmax (m/l/acc scratch) instead of only
    # capping TQ; pad C/H to 128 lanes for tiny channel counts; consider
    # pipeline_mode=pl.Buffered(1) on the batch-constant y / weight specs to
    # reclaim double-buffer VMEM on v7x, and a 2-way Vq core split for N == 1.
    out = pl.pallas_call(
        _cross_attention_kernel,
        out_shape=jax.ShapeDtypeStruct((n, vq_pad, c), out_dtype),
        grid_spec=pltpu.PrefetchScalarGridSpec(
            num_scalar_prefetch=0,
            grid=grid,
            in_specs=[
                pl.BlockSpec((pl.Squeezed(), tq, c), lambda b, qi: (b, qi, 0)),
                pl.BlockSpec((pl.Squeezed(), vk, c), lambda b, qi: (b, 0, 0)),
                pl.BlockSpec((c, h), lambda b, qi: (0, 0)),
                pl.BlockSpec((c, h), lambda b, qi: (0, 0)),
                pl.BlockSpec((c, c), lambda b, qi: (0, 0)),
            ],
            out_specs=pl.BlockSpec((pl.Squeezed(), tq, c),
                                   lambda b, qi: (b, qi, 0)),
            scratch_shapes=[
                pltpu.VMEM((vk, h), compute_dtype),   # k = y @ Wk (per batch)
                pltpu.VMEM((vk, c), compute_dtype),   # v = y @ Wv (per batch)
            ],
        ),
        compiler_params=pltpu.CompilerParams(
            # batch shards across TensorCores (v7x megacore); the Vq axis must
            # be sequential ("arbitrary") since k/v scratch persists across it.
            dimension_semantics=("parallel", "arbitrary"),
            vmem_limit_bytes=vmem_limit,
        ),
    )(x, y, wq, wk, wv)

    if vq_pad != vq:
        out = out[:, :vq, :]
    return out


def xavier_uniform(key, fan_in, fan_out, dtype=jnp.float32):
    bound = math.sqrt(6.0 / (fan_in + fan_out))
    return jax.random.uniform(key, (fan_in, fan_out), dtype=dtype,
                              minval=-bound, maxval=bound)


def cross_attention_ref(x, y, wq, wk, wv):
    # Pure-JAX f32 reference mirroring the PyTorch forward.
    h = wq.shape[1]
    scale = float(h) ** -0.5
    hi = jax.lax.Precision.HIGHEST
    q = jnp.einsum('nvc,co->nvo', x, wq, precision=hi)
    k = jnp.einsum('nvc,co->nvo', y, wk, precision=hi)
    v = jnp.einsum('nvc,co->nvo', y, wv, precision=hi)
    attn = jax.nn.softmax(jnp.einsum('nqc,nkc->nqk', q, k, precision=hi) * scale,
                          axis=-1)
    return jnp.einsum('nqk,nkc->nqc', attn, v, precision=hi)


if __name__ == "__main__":
    def _check(n, vq, vk, c, h, key, max_q_tile=256):
        kx, ky, kq, kk, kv = jax.random.split(key, 5)
        x = jax.random.normal(kx, (n, vq, c), dtype=jnp.float32)
        y = jax.random.normal(ky, (n, vk, c), dtype=jnp.float32)
        to_q = xavier_uniform(kq, c, h)   # (in_ch, hidden_dim)
        to_k = xavier_uniform(kk, c, h)   # (in_ch, hidden_dim)
        to_v = xavier_uniform(kv, c, c)   # (in_ch, in_ch)

        out = jax.block_until_ready(
            cross_attention(x, y, to_q, to_k, to_v, max_q_tile=max_q_tile))
        ref = cross_attention_ref(x, y, to_q, to_k, to_v)
        assert out.shape == ref.shape
        assert out.dtype == ref.dtype
        # bf16 operands (f32 accumulation) + approx reciprocal -> widened tol.
        assert jnp.allclose(out, ref, atol=2e-2, rtol=2e-2), \
            "mismatch vs. JAX reference"

    root = jax.random.PRNGKey(0)
    k_small, k_big, k_pad = jax.random.split(root, 3)

    # Small deterministic shapes: batch=2, query seq=16, key seq=8, in_ch=4, hidden=32.
    _check(2, 16, 8, 4, 32, k_small)
    # Larger, lane-dense shapes exercising the Vq-tile grid and k/v scratch reuse.
    _check(2, 512, 256, 128, 128, k_big, max_q_tile=256)
    # Non-divisible Vq exercising the pad-and-slice path (vq=200, tq=128 -> pad to 256).
    _check(1, 200, 48, 32, 64, k_pad, max_q_tile=128)

    print("KERNEL_OK")
</pallas_src>

<mosaic_0001>
module attributes {stable_mosaic.version = 11 : i64} {
  func.func @_cross_attention_kernel(%arg0: i32, %arg1: i32, %arg2: memref<1x16x4xbf16, #tpu.memory_space<vmem>>, %arg3: memref<1x8x4xbf16, #tpu.memory_space<vmem>>, %arg4: memref<4x32xbf16, #tpu.memory_space<vmem>>, %arg5: memref<4x32xbf16, #tpu.memory_space<vmem>>, %arg6: memref<4x4xbf16, #tpu.memory_space<vmem>>, %arg7: memref<1x16x4xf32, #tpu.memory_space<vmem>>, %arg8: memref<8x32xbf16, #tpu.memory_space<vmem>>, %arg9: memref<8x4xbf16, #tpu.memory_space<vmem>>) attributes {dimension_semantics = [#tpu.dimension_semantics<parallel>, #tpu.dimension_semantics<arbitrary>], iteration_bounds = array<i64: 2, 1>, scalar_prefetch = 0 : i64, scratch_operands = 2 : i64, tpu.core_type = #tpu.core_type<tc>, window_params = [{transform_indices = @transform_0, window_bounds = array<i64: 1, 16, 4>}, {transform_indices = @transform_1, window_bounds = array<i64: 1, 8, 4>}, {pipeline_mode = #tpu.pipeline_mode<synchronous>, transform_indices = @transform_2, window_bounds = array<i64: 4, 32>}, {pipeline_mode = #tpu.pipeline_mode<synchronous>, transform_indices = @transform_3, window_bounds = array<i64: 4, 32>}, {pipeline_mode = #tpu.pipeline_mode<synchronous>, transform_indices = @transform_4, window_bounds = array<i64: 4, 4>}, {transform_indices = @transform_5, window_bounds = array<i64: 1, 16, 4>}]} {
    %c0_i32 = arith.constant 0 : i32
    %0 = arith.cmpi eq, %arg1, %c0_i32 : i32
    %1 = arith.extui %0 : i1 to i32
    %c0_i32_0 = arith.constant 0 : i32
    %2 = arith.cmpi ne, %1, %c0_i32_0 : i32
    scf.if %2 {
      %c0_16 = arith.constant 0 : index
      %c0_17 = arith.constant 0 : index
      %c0_18 = arith.constant 0 : index
      %26 = vector.load %arg3[%c0_16, %c0_17, %c0_18] : memref<1x8x4xbf16, #tpu.memory_space<vmem>>, vector<1x8x4xbf16>
      %27 = vector.shape_cast %26 : vector<1x8x4xbf16> to vector<8x4xbf16>
      %c0_19 = arith.constant 0 : index
      %c0_20 = arith.constant 0 : index
      %28 = vector.load %arg5[%c0_19, %c0_20] : memref<4x32xbf16, #tpu.memory_space<vmem>>, vector<4x32xbf16>
      %cst_21 = arith.constant dense<0.000000e+00> : vector<8x32xf32>
      %29 = tpu.matmul %27, %28, %cst_21 {dimension_numbers = #tpu.dot_dimension_numbers<[1], [0], [0], [1], [0, 0, 1, 1], [], []>} : vector<8x4xbf16>, vector<4x32xbf16>, vector<8x32xf32> -> vector<8x32xf32>
      %30 = arith.truncf %29 : vector<8x32xf32> to vector<8x32xbf16>
      %c0_22 = arith.constant 0 : index
      %c0_23 = arith.constant 0 : index
      %31 = vector.load %arg8[%c0_22, %c0_23] : memref<8x32xbf16, #tpu.memory_space<vmem>>, vector<8x32xbf16>
      tpu.vector_store %arg8[%c0_22, %c0_23], %30 {strides = array<i32>} : memref<8x32xbf16, #tpu.memory_space<vmem>>, vector<8x32xbf16>,
      %c0_24 = arith.constant 0 : index
      %c0_25 = arith.constant 0 : index
      %32 = vector.load %arg6[%c0_24, %c0_25] : memref<4x4xbf16, #tpu.memory_space<vmem>>, vector<4x4xbf16>
      %cst_26 = arith.constant dense<0.000000e+00> : vector<8x4xf32>
      %33 = tpu.matmul %27, %32, %cst_26 {dimension_numbers = #tpu.dot_dimension_numbers<[1], [0], [0], [1], [0, 0, 1, 1], [], []>} : vector<8x4xbf16>, vector<4x4xbf16>, vector<8x4xf32> -> vector<8x4xf32>
      %34 = arith.truncf %33 : vector<8x4xf32> to vector<8x4xbf16>
      %c0_27 = arith.constant 0 : index
      %c0_28 = arith.constant 0 : index
      %35 = vector.load %arg9[%c0_27, %c0_28] : memref<8x4xbf16, #tpu.memory_space<vmem>>, vector<8x4xbf16>
      tpu.vector_store %arg9[%c0_27, %c0_28], %34 {strides = array<i32>} : memref<8x4xbf16, #tpu.memory_space<vmem>>, vector<8x4xbf16>,
    } else {
    }
    %c0 = arith.constant 0 : index
    %c0_1 = arith.constant 0 : index
    %c0_2 = arith.constant 0 : index
    %3 = vector.load %arg2[%c0, %c0_1, %c0_2] : memref<1x16x4xbf16, #tpu.memory_space<vmem>>, vector<1x16x4xbf16>
    %4 = vector.shape_cast %3 : vector<1x16x4xbf16> to vector<16x4xbf16>
    %c0_3 = arith.constant 0 : index
    %c0_4 = arith.constant 0 : index
    %5 = vector.load %arg4[%c0_3, %c0_4] : memref<4x32xbf16, #tpu.memory_space<vmem>>, vector<4x32xbf16>
    %cst = arith.constant dense<0.000000e+00> : vector<16x32xf32>
    %6 = tpu.matmul %4, %5, %cst {dimension_numbers = #tpu.dot_dimension_numbers<[1], [0], [0], [1], [0, 0, 1, 1], [], []>} : vector<16x4xbf16>, vector<4x32xbf16>, vector<16x32xf32> -> vector<16x32xf32>
    %7 = arith.truncf %6 : vector<16x32xf32> to vector<16x32xbf16>
    %c0_5 = arith.constant 0 : index
    %c0_6 = arith.constant 0 : index
    %8 = vector.load %arg8[%c0_5, %c0_6] : memref<8x32xbf16, #tpu.memory_space<vmem>>, vector<8x32xbf16>
    %cst_7 = arith.constant dense<0.000000e+00> : vector<16x8xf32>
    %9 = tpu.matmul %7, %8, %cst_7 {dimension_numbers = #tpu.dot_dimension_numbers<[1], [1], [0], [0], [0, 0, 1, 0], [], []>} : vector<16x32xbf16>, vector<8x32xbf16>, vector<16x8xf32> -> vector<16x8xf32>
    %cst_8 = arith.constant dense<0xFF800000> : vector<16xf32>
    %10 = vector.multi_reduction <maximumf>, %9, %cst_8 [1] : vector<16x8xf32> to vector<16xf32>
    %11 = vector.shape_cast %10 : vector<16xf32> to vector<16x1xf32>
    %12 = vector.broadcast %11 : vector<16x1xf32> to vector<16x8xf32>
    %13 = arith.subf %9, %12 : vector<16x8xf32>
    %14 = math.exp %13 : vector<16x8xf32>
    %cst_9 = arith.constant dense<0.000000e+00> : vector<16xf32>
    %15 = vector.multi_reduction <add>, %14, %cst_9 [1] : vector<16x8xf32> to vector<16xf32>
    %16 = vector.shape_cast %15 : vector<16xf32> to vector<16x1xf32>
    %17 = arith.truncf %14 : vector<16x8xf32> to vector<16x8xbf16>
    %c0_10 = arith.constant 0 : index
    %c0_11 = arith.constant 0 : index
    %18 = vector.load %arg9[%c0_10, %c0_11] : memref<8x4xbf16, #tpu.memory_space<vmem>>, vector<8x4xbf16>
    %cst_12 = arith.constant dense<0.000000e+00> : vector<16x4xf32>
    %19 = tpu.matmul %17, %18, %cst_12 {dimension_numbers = #tpu.dot_dimension_numbers<[1], [0], [0], [1], [0, 0, 1, 1], [], []>} : vector<16x8xbf16>, vector<8x4xbf16>, vector<16x4xf32> -> vector<16x4xf32>
    %20 = tpu.reciprocal %16 {approx = true} : vector<16x1xf32> -> vector<16x1xf32>
    %21 = vector.broadcast %20 : vector<16x1xf32> to vector<16x4xf32>
    %22 = arith.mulf %19, %21 : vector<16x4xf32>
    %c0_13 = arith.constant 0 : index
    %c0_14 = arith.constant 0 : index
    %c0_15 = arith.constant 0 : index
    %23 = vector.load %arg7[%c0_13, %c0_14, %c0_15] : memref<1x16x4xf32, #tpu.memory_space<vmem>>, vector<1x16x4xf32>
    %24 = vector.shape_cast %23 : vector<1x16x4xf32> to vector<16x4xf32>
    %25 = vector.shape_cast %22 : vector<16x4xf32> to vector<1x16x4xf32>
    tpu.vector_store %arg7[%c0_13, %c0_14, %c0_15], %25 {strides = array<i32>} : memref<1x16x4xf32, #tpu.memory_space<vmem>>, vector<1x16x4xf32>,
    return
  }
  func.func @transform_0(%arg0: i32, %arg1: i32) -> (i32, i32, i32) {
    %c0_i32 = arith.constant 0 : i32
    %c0_i32_0 = arith.constant 0 : i32
    return %arg0, %arg1, %c0_i32 : i32, i32, i32
  }
  func.func @transform_1(%arg0: i32, %arg1: i32) -> (i32, i32, i32) {
    %c0_i32 = arith.constant 0 : i32
    %c0_i32_0 = arith.constant 0 : i32
    %c0_i32_1 = arith.constant 0 : i32
    return %arg0, %c0_i32, %c0_i32_0 : i32, i32, i32
  }
  func.func @transform_2(%arg0: i32, %arg1: i32) -> (i32, i32) {
    %c0_i32 = arith.constant 0 : i32
    %c0_i32_0 = arith.constant 0 : i32
    %c0_i32_1 = arith.constant 0 : i32
    return %c0_i32, %c0_i32_0 : i32, i32
  }
  func.func @transform_3(%arg0: i32, %arg1: i32) -> (i32, i32) {
    %c0_i32 = arith.constant 0 : i32
    %c0_i32_0 = arith.constant 0 : i32
    %c0_i32_1 = arith.constant 0 : i32
    return %c0_i32, %c0_i32_0 : i32, i32
  }
  func.func @transform_4(%arg0: i32, %arg1: i32) -> (i32, i32) {
    %c0_i32 = arith.constant 0 : i32
    %c0_i32_0 = arith.constant 0 : i32
    %c0_i32_1 = arith.constant 0 : i32
    return %c0_i32, %c0_i32_0 : i32, i32
  }
  func.func @transform_5(%arg0: i32, %arg1: i32) -> (i32, i32, i32) {
    %c0_i32 = arith.constant 0 : i32
    %c0_i32_0 = arith.constant 0 : i32
    return %arg0, %arg1, %c0_i32 : i32, i32, i32
  }
}

</mosaic_0001>

<bundles_post_ra>
// kernel: tpu_custom_call.1
= control target key start
LH: loop header
LB: loop body
LE: loop exit
PB: predicated region body
PF: predicated region fallthrough
CT: control target
= control target key end

     0   :  { %s818_s18 = smov 0   ;;  %s820_s19 = smov 0   ;;  %s886_s0 = inlined_call_operand.vmem [shape: bf16[2,16,4], index: 0, kind: input, shape index: {}]   ;;  %s887_s1 = inlined_call_operand.vmem [shape: bf16[2,8,4], index: 1, kind: input, shape index: {}]   ;;  %s888_s2 = inlined_call_operand.vmem [shape: bf16[4,32], index: 2, kind: input, shape index: {}]   ;;  %s889_s3 = inlined_call_operand.vmem [shape: bf16[4,32], index: 3, kind: input, shape index: {}]   ;;  %s890_s4 = inlined_call_operand.vmem [shape: bf16[4,4], index: 4, kind: input, shape index: {}]   ;;  %s891_s5 = inlined_call_operand.vmem [shape: f32[2,16,4], index: 5, kind: output, shape index: {}]  }
   0x1   :  { %s822_s20 = smov 0  }
   0x2 LB: > { %s27_s21 = sadd.s32 1, %s780_s19  ;;  %p671_p0 = scmp.ge.s32.totalorder %s784_s20, 1  ;;  %s784_s20 = sphi %s822_s20, %s15_s20   ;;  %s780_s19 = sphi %s820_s19, %s893_s19   ;;  %s776_s18 = sphi %s818_s18, %s892_s18  }
   0x3   : > { %p29_p1 = scmp.ge.s32.totalorder %s27_s21, 2  ;;  %p217_p2 = scmp.lt.s32.totalorder %s784_s20, 3 }
   0x5   : > { %s895_s21 = smov (%p29_p1, %s27_s21), 0  ;;  %p218_p3 = pnand %p671_p0, %p217_p2 }
   0x6   : > { %p258_p4 = scmp.lt.s32.totalorder (!%p218_p3), %s776_s18, 1 }
   0x7   : > { %221 = sbr.rel (%p218_p3) target bundleno = 784 (0x310), region = 40 }
   0xc   : > { %v287_v0 = vld [vmem:[%s889_s3] sm:$0x3]  ;;  %vm292_vm0 = vcmask 1041408   ;;  %v786_v1 = vmov 0.0   ;;  %vm787_vm1 = vmmov 0   ;;  %s897_s18 = smov (!%p258_p4, %s776_s18), 1 }
   0xd   : > { %697 = vmatprep.subr.bf16.mxu0 %v786_v1  ;;  %v294_v2 = vsel %vm292_vm0, %v287_v0, 0  ;;  %699 = vmatprep.mubr.msk.bf16.mxu0 %vm787_vm1, %v786_v1  ;;  %v388_v3 = vld [vmem:[%s888_s2] sm:$0x3]  ;;  %s685_s26 = sshll.u32 %s897_s18, 3  ;;  %s674_s27 = sshll.u32 %s897_s18, 2  ;;  %vm288_vm2 = vcmask 31744  }
   0xe   : > { %698 = vmatpush3.bf16.msra.mxu0 %v294_v2  ;;  %703 = vmatprep.subr.bf16.mxu1 %v786_v1  ;;  %s265_s30 = scalar_lea.vmem %s886_s0, %s685_s26  ;;  %s270_s8 = scalar_lea.vmem %s887_s1, %s674_s27  ;;  %v400_v4 = vsel %vm292_vm0, %v388_v3, 0  ;;  %v339_v7 = vld [vmem:[%s890_s4] sm:$0x3]  ;;  %vm337_vm3 = vcmask 257024   ;;  %vm445_vm4 = vcmask 261120   ;;  %vm384_vm5 = vcmask 27648  }
   0xf   : > { %709 = vmatprep.subr.bf16.mxu0 %v786_v1  ;;  %705 = vmatprep.mubr.msk.bf16.mxu1 %vm787_vm1, %v786_v1  ;;  %v286_v5 = vld [vmem:[%s270_s8] sm:$0xf]  ;;  %v341_v8 = vsel %vm292_vm0, %v339_v7, 0  ;;  %vm517_vm6 = vcmask 1043456   ;;  %vm493_vm7 = vcmask 64512   ;;  %s686_s11 = sshll.u32 %s897_s18, 4 }
  0x10   : > { %v753_v6 = vld [vmem:[%s265_s30] sm:$0xff]   ;;  %704 = vmatpush3.bf16.msra.mxu1 %v341_v8  ;;  %s279_s14 = scalar_lea.vmem %s891_s5, %s686_s11 }
  0x11   : > { %700 = vmatmul.mubr.msk.bf16.vlgmr.msra.gmra.mxu0 %vm288_vm2, %v286_v5  ;;  %715 = vmatprep.subr.bf16.mxu1 %v786_v1 }
  0x12   : > { %710 = vmatpush3.bf16.msra.mxu0 %v400_v4  ;;  %711 = vmatprep.mubr.msk.bf16.mxu0 %vm787_vm1, %v786_v1 }
  0x13   : > { %721 = vmatprep.subr.bf16.mxu0 %v786_v1  ;;  %706 = vmatmul.mubr.msk.bf16.vlgmr.msra.gmra.mxu1 %vm288_vm2, %v286_v5 }
  0x14   : > { %717 = vmatprep.mubr.msk.bf16.mxu1 %vm787_vm1, %v786_v1 }
  0x19   : > { %712 = vmatmul.mubr.msk.bf16.vlgmr.msra.gmra.mxu0 %vm288_vm2, %v753_v6 }
  0x1a   : > { %723 = vmatprep.mubr.msk.bf16.mxu0 %vm787_vm1, %v786_v1 }
  0xd1   : > { %v330_v9 = vpop.f32.mrf.mxu0 }
  0xd2   : > { %v336_v10 = vpack.c.bf16 %v330_v9, %v330_v9 }
  0xd3   : > { %v701_v11 = vpop.f32.mrf.mxu0  ;;  %v377_v21 = vpop.f32.mrf.mxu1 }
  0xd4   : > { %338 = vst.msk [vmem:[#allocation2] sm:$0xf] %vm337_vm3, %v336_v10  ;;  %v383_v22 = vpack.c.bf16 %v377_v21, %v377_v21 }
  0xd5   : > { %v333_v12 = vpop.f32.mrf.mxu0  ;;  %v707_v23 = vpop.f32.mrf.mxu1 }
  0xd6   : > { %385 = vst.msk [vmem:[#allocation3] sm:$0xf] %vm384_vm5, %v383_v22 }
  0xd7   : > { %v702_v13 = vpop.f32.mrf.mxu0  ;;  %v380_v24 = vpop.f32.mrf.mxu1 }
  0xd9   : > { %v436_v14 = vpop.f32.mrf.mxu0  ;;  %v708_v25 = vpop.f32.mrf.mxu1 }
  0xdb   : > { %v713_v15 = vpop.f32.mrf.mxu0  ;;  %v444_v16 = vld [vmem:[#allocation2] sm:$0xf] }
  0xdc   : > { %v450_v17 = vsel %vm445_vm4, %v444_v16, 0 }
  0xdd   : > { %v439_v18 = vpop.f32.mrf.mxu0  ;;  %716 = vmatpush3.bf16.xpose.msra.mxu1 %v450_v17  ;;  %v513_v26 = vld [vmem:[#allocation3] sm:$0xf] }
  0xde   : > { %v443_v20 = vpack.c.bf16 %v439_v18, %v436_v14  ;;  %v519_v27 = vsel %vm517_vm6, %v513_v26, 0 }
  0xdf   : > { %v714_v19 = vpop.f32.mrf.mxu0  ;;  %722 = vmatpush3.bf16.msra.mxu0 %v519_v27 }
  0xe4   : > { %718 = vmatmul.mubr.msk.bf16.vlgmr.msra.gmra.mxu1 %vm445_vm4, %v443_v20 }
 0x1a4   : > { %v486_v28 = vpop.f32.mrf.mxu1 }
 0x1a5   : > { %v494_v29 = vsel %vm493_vm7, %v486_v28, -inf }
 0x1a6   : > { %495 = vmax.xlane.f32.xlu0 %v494_v29  ;;  %v719_v30 = vpop.f32.mrf.mxu1 }
 0x1a8   : > { %v489_v31 = vpop.f32.mrf.mxu1 }
 0x1a9   : > { %v497_v32 = vsel %vm493_vm7, %v489_v31, -inf }
 0x1aa   : > { %498 = vmax.xlane.f32.xlu0 %v497_v32  ;;  %v720_v33 = vpop.f32.mrf.mxu1 }
 0x22f   : > { %v496_v34 = vpop.xlane.xlu0 %495 }
 0x230   : > { %v500_v35 = vsub.f32 %v486_v28, %v496_v34 }
 0x232   : > { %v502_v36 = vmul.f32 1.442695, %v500_v35 }
 0x233   : > { %v499_v37 = vpop.xlane.xlu0 %498 }
 0x234   : > { %754 = vpow2.f32 %v502_v36  ;;  %v501_v38 = vsub.f32 %v489_v31, %v499_v37 }
 0x236   : > { %v504_v39 = vmul.f32 1.442695, %v501_v38 }
 0x238   : > { %756 = vpow2.f32 %v504_v39 }
 0x241   : > { %v755_v40 = vpop.eup %754 }
 0x242   : > { %v506_v41 = vsel %vm493_vm7, %v755_v40, 0.0 }
 0x243   : > { %507 = vadd.xlane.f32.xlu1 %v506_v41 }
 0x245   : > { %v757_v42 = vpop.eup %756 }
 0x246   : > { %v509_v43 = vsel %vm493_vm7, %v757_v42, 0.0  ;;  %v512_v44 = vpack.c.bf16 %v757_v42, %v755_v40 }
 0x247   : > { %510 = vadd.xlane.f32.xlu1 %v509_v43 }
 0x248   : > { %724 = vmatmul.mubr.msk.bf16.vlgmr.msra.gmra.mxu0 %vm493_vm7, %v512_v44 }
 0x2cc   : > { %v508_v45 = vpop.xlane.xlu1 %507 }
 0x2cd   : > { %758 = vrcp.f32 %v508_v45 }
 0x2d0   : > { %v511_v46 = vpop.xlane.xlu1 %510 }
 0x2d1   : > { %760 = vrcp.f32 %v511_v46 }
 0x2da   : > { %v759_v47 = vpop.eup %758 }
 0x2de   : > { %v761_v51 = vpop.eup %760 }
 0x308   : > { %v555_v48 = vpop.f32.mrf.mxu0 }
 0x309   : > { %v564_v49 = vmul.f32 %v759_v47, %v555_v48 }
 0x30a   : > { %v725_v50 = vpop.f32.mrf.mxu0 }
 0x30b   : > { %566 = vst.msk [vmem:[%s279_s14] sm:$0xff] %vm288_vm2, %v564_v49 }
 0x30c   : > { %v558_v52 = vpop.f32.mrf.mxu0 }
 0x30d   : > { %v565_v53 = vmul.f32 %v761_v51, %v558_v52 }
 0x30e   : > { %v726_v54 = vpop.f32.mrf.mxu0 }
 0x30f   : > { %567 = vst.msk [vmem:[%s279_s14 + $0x8] sm:$0xff] %vm288_vm2, %v565_v53 }
 0x310 PF: > { %s15_s20 = sadd.s32 1, %s784_s20   ;;  %s892_s18 = smov %s780_s19 }
 0x311   : > { %p12_p5 = scmp.ge.s32.totalorder %s15_s20, 4   ;;  %s893_s19 = smov %s895_s21 }
 0x313   :  { %14 = sbr.rel (!%p12_p5) target bundleno = 2 (0x2), region = 77 }

</bundles_post_ra>
